<compile_context>
chip_gen: v7x
topology: tpu7x:2x2x1
jax: 0.10.0
libtpu: 0.0.40
codegen_flags: <defaults>
</compile_context>

<pallas_src>
import functools

import jax
import jax.numpy as jnp
import numpy as np
from jax.experimental import pallas as pl
from jax.experimental.pallas import tpu as pltpu


def _grad_kernel(x_ref, o_ref, *, H, W):
    # Block shape: (R, H*W).  Each row is one full flattened (H, W) plane, so
    # every output element depends only on elements of its own row (partial /
    # padded boundary blocks are therefore safe).
    HW = H * W
    x = x_ref[...].astype(jnp.float32)          # compute in f32
    R = x.shape[0]

    # --- vertical diff: x[h+1,w] - x[h-1,w]  == flattened shift by +/-W ------
    if H == 1:
        v = jnp.zeros_like(x)
    elif H == 2:
        v = jnp.concatenate([x[:, W:], -x[:, :W]], axis=1)
    else:
        v = jnp.concatenate(
            [x[:, W:2 * W],                       # first image row:   x[i+W]
             x[:, 2 * W:] - x[:, :HW - 2 * W],    # interior:          x[i+W]-x[i-W]
             -x[:, HW - 2 * W:HW - W]],           # last image row:   -x[i-W]
            axis=1)

    # --- horizontal diff: x[h,w+1] - x[h,w-1], zeroed at image-row edges -----
    z1 = jnp.zeros((R, 1), jnp.float32)
    nxt = jnp.concatenate([x[:, 1:], z1], axis=1)    # x[i+1] (flattened)
    prv = jnp.concatenate([z1, x[:, :-1]], axis=1)   # x[i-1] (flattened)
    wpos = jax.lax.broadcasted_iota(jnp.int32, (1, HW), 1) % W
    h = jnp.where(wpos == W - 1, 0.0, nxt) - jnp.where(wpos == 0, 0.0, prv)

    o_ref[...] = jnp.sqrt(v * v + h * h + jnp.float32(1e-6)).astype(o_ref.dtype)


def _rows_per_block(P, HW, itemsize, block_bytes):
    """Planes (rows) per block: multiple of the sublane tile or full extent."""
    sub = max(8, 32 // max(itemsize, 1))          # 8 (f32) / 16 (bf16) / 32 (i8)
    plane_bytes = max(HW * itemsize, 1)
    max_rows = (block_bytes // plane_bytes) // sub * sub
    if max_rows <= 0:
        # TODO(synk): planes larger than the block budget need H-strip tiling
        # with a 1-row halo (manual-DMA P4 pattern); fall back to minimum block.
        max_rows = sub
    if max_rows >= P:
        # Whole input fits in one block: split into >=2 blocks when legal so the
        # "parallel" grid axis can still shard across v7x's two TensorCores.
        if P >= 2 * sub:
            return max(sub, (P // 2) // sub * sub)
        return P
    return max_rows


def get_gradient_nopadding(x, *, block_bytes=2 << 20):
    """x: (N, C, H, W) -> (N, C, H, W) gradient magnitude, same dtype as x."""
    N, C, H, W = x.shape
    P, HW = N * C, H * W
    itemsize = jnp.dtype(x.dtype).itemsize
    xf = x.reshape(P, HW)                         # free reshape (contiguous merge)

    R = _rows_per_block(P, HW, itemsize, block_bytes)
    grid = (pl.cdiv(P, R),)

    out = pl.pallas_call(
        functools.partial(_grad_kernel, H=H, W=W),
        out_shape=jax.ShapeDtypeStruct((P, HW), x.dtype),
        grid=grid,
        in_specs=[pl.BlockSpec((R, HW), lambda i: (i, 0))],
        out_specs=pl.BlockSpec((R, HW), lambda i: (i, 0)),
        compiler_params=pltpu.CompilerParams(
            dimension_semantics=("parallel",),
            vmem_limit_bytes=32 << 20),
        cost_estimate=pl.CostEstimate(
            flops=6 * P * HW,
            transcendentals=P * HW,
            bytes_accessed=2 * P * HW * itemsize),
    )(xf)
    return out.reshape(N, C, H, W)


def _reference(x):
    """Pure-JAX reference of the PyTorch module (zero-padded shifted diffs)."""
    xf = x.astype(jnp.float32)
    xp = jnp.pad(xf, ((0, 0), (0, 0), (1, 1), (1, 1)))
    v = xp[:, :, 2:, 1:-1] - xp[:, :, :-2, 1:-1]   # x[h+1] - x[h-1]
    h = xp[:, :, 1:-1, 2:] - xp[:, :, 1:-1, :-2]   # x[w+1] - x[w-1]
    return jnp.sqrt(v * v + h * h + 1e-6)


if __name__ == "__main__":
    key = jax.random.PRNGKey(0)
    x = jax.random.normal(key, (2, 4, 16, 16), dtype=jnp.float32)

    # f32 path
    out = jax.block_until_ready(get_gradient_nopadding(x))
    np.testing.assert_allclose(np.asarray(out), np.asarray(_reference(x)),
                               rtol=1e-5, atol=1e-5)

    # bf16 I/O path (kernel math stays f32; halves HBM bytes)
    xb = x.astype(jnp.bfloat16)
    outb = jax.block_until_ready(get_gradient_nopadding(xb))
    np.testing.assert_allclose(np.asarray(outb, dtype=np.float32),
                               np.asarray(_reference(xb)),
                               rtol=2e-2, atol=2e-2)

    print("KERNEL_OK")
</pallas_src>

<mosaic_0001>
module attributes {stable_mosaic.version = 11 : i64} {
  func.func @_grad_kernel(%arg0: i32, %arg1: memref<8x256xf32, #tpu.memory_space<vmem>>, %arg2: memref<8x256xf32, #tpu.memory_space<vmem>>) attributes {dimension_semantics = [#tpu.dimension_semantics<parallel>], iteration_bounds = array<i64: 1>, scalar_prefetch = 0 : i64, scratch_operands = 0 : i64, tpu.core_type = #tpu.core_type<tc>, window_params = [{transform_indices = @transform_0, window_bounds = array<i64: 8, 256>}, {transform_indices = @transform_1, window_bounds = array<i64: 8, 256>}]} {
    %c0 = arith.constant 0 : index
    %c0_0 = arith.constant 0 : index
    %0 = vector.load %arg1[%c0, %c0_0] : memref<8x256xf32, #tpu.memory_space<vmem>>, vector<8x256xf32>
    %1 = vector.extract_strided_slice %0 {offsets = [0, 16], sizes = [8, 16], strides = [1, 1]} : vector<8x256xf32> to vector<8x16xf32>
    %2 = vector.extract_strided_slice %0 {offsets = [0, 32], sizes = [8, 224], strides = [1, 1]} : vector<8x256xf32> to vector<8x224xf32>
    %3 = vector.extract_strided_slice %0 {offsets = [0, 0], sizes = [8, 224], strides = [1, 1]} : vector<8x256xf32> to vector<8x224xf32>
    %4 = arith.subf %2, %3 : vector<8x224xf32>
    %5 = vector.extract_strided_slice %0 {offsets = [0, 224], sizes = [8, 16], strides = [1, 1]} : vector<8x256xf32> to vector<8x16xf32>
    %cst = arith.constant 0.000000e+00 : f32
    %6 = vector.broadcast %cst : f32 to vector<8x16xf32>
    %7 = arith.subf %6, %5 : vector<8x16xf32>
    %8 = tpu.concatenate %1, %4, %7 in 1 : vector<8x16xf32>, vector<8x224xf32>, vector<8x16xf32> -> vector<8x256xf32>
    %cst_1 = arith.constant 0.000000e+00 : f32
    %9 = vector.broadcast %cst_1 : f32 to vector<8x1xf32>
    %10 = vector.extract_strided_slice %0 {offsets = [0, 1], sizes = [8, 255], strides = [1, 1]} : vector<8x256xf32> to vector<8x255xf32>
    %11 = tpu.concatenate %10, %9 in 1 : vector<8x255xf32>, vector<8x1xf32> -> vector<8x256xf32>
    %12 = vector.extract_strided_slice %0 {offsets = [0, 0], sizes = [8, 255], strides = [1, 1]} : vector<8x256xf32> to vector<8x255xf32>
    %13 = tpu.concatenate %9, %12 in 1 : vector<8x1xf32>, vector<8x255xf32> -> vector<8x256xf32>
    %14 = tpu.iota {dimensions = array<i32: 1>} : vector<1x256xi32>
    %c16_i32 = arith.constant 16 : i32
    %c0_i32 = arith.constant 0 : i32
    %15 = arith.cmpi eq, %c16_i32, %c0_i32 : i32
    %c1_i32 = arith.constant 1 : i32
    %16 = arith.select %15, %c1_i32, %c16_i32 : i32
    %17 = vector.broadcast %16 : i32 to vector<1x256xi32>
    %18 = arith.remsi %14, %17 : vector<1x256xi32>
    %c0_i32_2 = arith.constant 0 : i32
    %19 = vector.broadcast %c0_i32_2 : i32 to vector<1x256xi32>
    %20 = arith.cmpi ne, %18, %19 : vector<1x256xi32>
    %c0_i32_3 = arith.constant 0 : i32
    %21 = vector.broadcast %c0_i32_3 : i32 to vector<1x256xi32>
    %22 = arith.cmpi slt, %18, %21 : vector<1x256xi32>
    %c0_i32_4 = arith.constant 0 : i32
    %23 = arith.cmpi slt, %16, %c0_i32_4 : i32
    %24 = vector.broadcast %23 : i1 to vector<1x256xi1>
    %25 = vector.broadcast %24 : vector<1x256xi1> to vector<1x256xi1>
    %26 = arith.xori %22, %25 : vector<1x256xi1>
    %27 = arith.andi %26, %20 : vector<1x256xi1>
    %28 = vector.broadcast %16 : i32 to vector<1x256xi32>
    %29 = arith.addi %18, %28 : vector<1x256xi32>
    %30 = arith.select %27, %29, %18 : vector<1x256xi1>, vector<1x256xi32>
    %c15_i32 = arith.constant 15 : i32
    %31 = vector.broadcast %c15_i32 : i32 to vector<1x256xi32>
    %32 = arith.cmpi eq, %30, %31 : vector<1x256xi32>
    %cst_5 = arith.constant 0.000000e+00 : f32
    %33 = vector.shape_cast %32 : vector<1x256xi1> to vector<1x256xi1>
    %34 = vector.broadcast %33 : vector<1x256xi1> to vector<8x256xi1>
    %35 = vector.broadcast %cst_5 : f32 to vector<8x256xf32>
    %36 = arith.select %34, %35, %11 : vector<8x256xi1>, vector<8x256xf32>
    %c0_i32_6 = arith.constant 0 : i32
    %37 = vector.broadcast %c0_i32_6 : i32 to vector<1x256xi32>
    %38 = arith.cmpi eq, %30, %37 : vector<1x256xi32>
    %cst_7 = arith.constant 0.000000e+00 : f32
    %39 = vector.shape_cast %38 : vector<1x256xi1> to vector<1x256xi1>
    %40 = vector.broadcast %39 : vector<1x256xi1> to vector<8x256xi1>
    %41 = vector.broadcast %cst_7 : f32 to vector<8x256xf32>
    %42 = arith.select %40, %41, %13 : vector<8x256xi1>, vector<8x256xf32>
    %43 = arith.subf %36, %42 : vector<8x256xf32>
    %44 = arith.mulf %8, %8 : vector<8x256xf32>
    %45 = arith.mulf %43, %43 : vector<8x256xf32>
    %46 = arith.addf %44, %45 : vector<8x256xf32>
    %cst_8 = arith.constant 9.99999997E-7 : f32
    %47 = vector.broadcast %cst_8 : f32 to vector<8x256xf32>
    %48 = arith.addf %46, %47 : vector<8x256xf32>
    %49 = math.sqrt %48 : vector<8x256xf32>
    %c0_9 = arith.constant 0 : index
    %c0_10 = arith.constant 0 : index
    %50 = vector.load %arg2[%c0_9, %c0_10] : memref<8x256xf32, #tpu.memory_space<vmem>>, vector<8x256xf32>
    tpu.vector_store %arg2[%c0_9, %c0_10], %49 {strides = array<i32>} : memref<8x256xf32, #tpu.memory_space<vmem>>, vector<8x256xf32>,
    return
  }
  func.func @transform_0(%arg0: i32) -> (i32, i32) {
    %c0_i32 = arith.constant 0 : i32
    %c0_i32_0 = arith.constant 0 : i32
    return %arg0, %c0_i32 : i32, i32
  }
  func.func @transform_1(%arg0: i32) -> (i32, i32) {
    %c0_i32 = arith.constant 0 : i32
    %c0_i32_0 = arith.constant 0 : i32
    return %arg0, %c0_i32 : i32, i32
  }
}

</mosaic_0001>

<bundles_post_ra>
// kernel: tpu_custom_call.1
= control target key start
LH: loop header
LB: loop body
LE: loop exit
PB: predicated region body
PF: predicated region fallthrough
CT: control target
= control target key end

     0   :  { %6 = vsyncpa [#allocation3], 0  ;;  %s258_s0 = inlined_call_operand.hbm [shape: f32[8,256], index: 0, kind: input, shape index: {}]   ;;  %s259_s1 = inlined_call_operand.hbm [shape: f32[8,256], index: 1, kind: output, shape index: {}]  }
   0x1   :  { %7 = vsyncpa [#allocation4], 0  ;;  %s217_s6 = smov [#allocation2]   ;;  %s169_s10 = scalar_lea.hbm %s258_s0, 256 }
   0x2   :  { %s14_s7 = sshll.u32 %s217_s6, 4  ;;  %p170_p0 = scmp.ne.s32.totalorder %s258_s0, %s169_s10  ;;  %s15_s7 = int_to_ptr.vmem [resolvable:$true] %s14_s7 }
   0x3   :  { %p173_p1 = scmp.lt.u32.totalorder %s169_s10, %s258_s0 }
   0x5   :  { %p175_p2 = pnand %p173_p1, %p170_p0 }
   0x7   :  { %178 = shalt.err (!%p175_p2)
}
   0x8   :  { %s179_s15 = scalar_lea.vmem %s15_s7, 256  ;;  %p184_p4 = scmp.lt.s32.totalorder %s15_s7, %s15_s7 }
   0x9   :  { %p180_p3 = scmp.ne.s32.totalorder %s15_s7, %s179_s15  ;;  %p185_p5 = scmp.lt.s32.totalorder %s179_s15, %s179_s15 }
   0xb   :  { %p186_p6 = por %p185_p5, %p184_p4 }
   0xd   :  { %p187_p7 = pnand %p186_p6, %p180_p3 }
   0xf   :  { %190 = shalt.err (!%p187_p7)
}
  0x10   :  { %17 = dma.hbm_to_vmem [thread:$0]  %s258_s0, 256, %s15_s7, [#allocation3]  }
  0x11   :  { %213 = dma.done.wait [#allocation3], 256  }
  0x12   :  { %214 = vsyncadd [#allocation3], 4294967040  ;;  %v21_v0 = vld [vmem:[#allocation2] sm:$0xff]  ;;  %s218_s18 = smov 32   ;;  %s219_s19 = smov 127   ;;  %v22_v1 = vld [vmem:[#allocation2 + $0x8] sm:$0xff]  ;;  %v74_v9 = vlaneseq }
  0x13   :  { %25 = vrot.lane.b32.xlu0 %v21_v0, %s218_s18  ;;  %56 = vrot.lane.b32.xlu1 %v21_v0, %s219_s19  ;;  %s220_s20 = smov 1   ;;  %vm29_vm0 = vcmask 261120   ;;  %s221_s21 = smov 112   ;;  %v35_v7 = vsub.f32 0.0, %v22_v1  ;;  %vm60_vm1 = vcmask 1039360   ;;  %vm69_vm2 = vcmask 7168  }
  0x14   :  { %s222_s0 = smov 16   ;;  %v75_v10 = vand.u32 127, %v74_v9  ;;  %vm45_vm7 = vcmask 916480   ;;  %vm53_vm8 = vcmask 130048   ;;  %s223_s22 = smov [#allocation5]  }
  0x15   :  { %s149_s23 = sshll.u32 %s223_s22, 4  ;;  %s150_s23 = int_to_ptr.vmem [resolvable:$true] %s149_s23 }
  0x16   :  { %v76_v11 = vadd.s32 128, %v75_v10  ;;  %v81_v13 = vand.u32 15, %v75_v10  ;;  %s191_s24 = scalar_lea.vmem %s150_s23, 256  ;;  %p196_p9 = scmp.lt.s32.totalorder %s150_s23, %s150_s23 }
  0x17   :  { %27 = vrot.lane.b32.xlu0 %v22_v1, %s218_s18  ;;  %58 = vrot.lane.b32.xlu1 %v22_v1, %s219_s19  ;;  %p192_p8 = scmp.ne.s32.totalorder %s150_s23, %s191_s24  ;;  %p197_p10 = scmp.lt.s32.totalorder %s191_s24, %s191_s24 }
  0x18   :  { %v88_v15 = vand.u32 15, %v76_v11  ;;  %vm101_vm3 = vcmp.eq.s32.totalorder %v81_v13, 15  ;;  %vm109_vm4 = vcmp.eq.s32.totalorder %v81_v13, 0 }
  0x19   :  { %p198_p11 = por %p197_p10, %p196_p9 }
  0x1a   :  { %vm102_vm5 = vcmp.eq.s32.totalorder %v88_v15, 15  ;;  %vm110_vm6 = vcmp.eq.s32.totalorder %v88_v15, 0 }
  0x1b   :  { %65 = vrot.lane.b32.xlu0 %v21_v0, %s220_s20  ;;  %67 = vrot.lane.b32.xlu1 %v22_v1, %s220_s20  ;;  %p199_p12 = pnand %p198_p11, %p192_p8 }
  0x85   :  { %v26_v2 = vpop.permute.xlu0 %25  ;;  %v57_v8 = vpop.permute.xlu1 %56 }
  0x86   :  { %v33_v3 = vsub.f32 %v21_v0, %v26_v2 }
  0x88   :  { %41 = vrot.lane.b32.xlu0 %v33_v3, %s221_s21 }
  0x89   :  { %v28_v4 = vpop.permute.xlu0 %27  ;;  %v59_v12 = vpop.permute.xlu1 %58 }
  0x8a   :  { %v30_v5 = vsel %vm29_vm0, %v26_v2, %v28_v4  ;;  %v61_v16 = vsel %vm60_vm1, %v57_v8, %v59_v12  ;;  %v64_v20 = vsel %vm60_vm1, %v59_v12, 0.0 }
  0x8b   :  { %v34_v6 = vsub.f32 %v22_v1, %v30_v5  ;;  %v107_v21 = vsel %vm101_vm3, 0.0, %v61_v16  ;;  %v108_v24 = vsel %vm102_vm5, 0.0, %v64_v20 }
  0x8c   :  { %36 = vrot.lane.b32.xlu0 %v21_v0, %s221_s21 }
  0x8d   :  { %43 = vrot.lane.b32.xlu1 %v34_v6, %s221_s21  ;;  %v66_v14 = vpop.permute.xlu0 %65  ;;  %v68_v18 = vpop.permute.xlu1 %67 }
  0x8e   :  { %v73_v17 = vsel %vm69_vm2, 0.0, %v66_v14  ;;  %v70_v23 = vsel %vm69_vm2, %v66_v14, %v68_v18 }
  0x8f   :  { %v115_v22 = vsel %vm109_vm4, 0.0, %v73_v17  ;;  %v116_v26 = vsel %vm110_vm6, 0.0, %v70_v23 }
  0x90   :  { %v117_v25 = vsub.f32 %v107_v21, %v115_v22  ;;  %v118_v30 = vsub.f32 %v108_v24, %v116_v26 }
  0x91   :  { %50 = vrot.lane.b32.xlu1 %v35_v7, %s222_s0 }
  0x92   :  { %v121_v32 = vmul.f32 %v117_v25, %v117_v25  ;;  %v122_v37 = vmul.f32 %v118_v30, %v118_v30 }
  0xfa   :  { %v42_v19 = vpop.permute.xlu0 %41 }
  0xfe   :  { %v37_v27 = vpop.permute.xlu0 %36 }
  0xff   :  { %v44_v28 = vpop.permute.xlu1 %43 }
 0x100   :  { %v46_v29 = vsel %vm45_vm7, %v42_v19, %v44_v28 }
 0x101   :  { %v54_v31 = vsel %vm53_vm8, %v37_v27, %v46_v29 }
 0x102   :  { %v119_v33 = vmul.f32 %v54_v31, %v54_v31 }
 0x103   :  { %v51_v34 = vpop.permute.xlu1 %50 }
 0x104   :  { %v123_v35 = vadd.f32 %v121_v32, %v119_v33  ;;  %v55_v36 = vsel %vm45_vm7, %v44_v28, %v51_v34 }
 0x105   :  { %v120_v38 = vmul.f32 %v55_v36, %v55_v36 }
 0x106   :  { %v125_v39 = vadd.f32 1e-06, %v123_v35 }
 0x107   :  { %v124_v40 = vadd.f32 %v122_v37, %v120_v38 }
 0x108   :  { %165 = vrsqrt.f32 %v125_v39  ;;  %vm129_vm9 = vcmp.eq.f32.partialorder %v125_v39, inf  ;;  %v132_v44 = vand.u32 2147483648, %v125_v39  ;;  %vm131_vm10 = vcmp.eq.f32.partialorder %v125_v39, 0.0 }
 0x109   :  { %v126_v41 = vadd.f32 1e-06, %v124_v40 }
 0x10b   :  { %167 = vrsqrt.f32 %v126_v41  ;;  %vm136_vm11 = vcmp.eq.f32.partialorder %v126_v41, inf  ;;  %v139_v49 = vand.u32 2147483648, %v126_v41  ;;  %vm138_vm12 = vcmp.eq.f32.partialorder %v126_v41, 0.0 }
 0x112   :  { %v166_v42 = vpop.eup %165 }
 0x113   :  { %v128_v43 = vmul.f32 %v166_v42, %v125_v39 }
 0x115   :  { %v168_v45 = vpop.eup %167  ;;  %v130_v46 = vsel %vm129_vm9, %v125_v39, %v128_v43 }
 0x116   :  { %v133_v47 = vsel %vm131_vm10, %v132_v44, %v130_v46  ;;  %v135_v48 = vmul.f32 %v168_v45, %v126_v41 }
 0x117   :  { %141 = vst [vmem:[#allocation5] sm:$0xff] %v133_v47 }
 0x118   :  { %v137_v50 = vsel %vm136_vm11, %v126_v41, %v135_v48 }
 0x119   :  { %v140_v51 = vsel %vm138_vm12, %v139_v49, %v137_v50 }
 0x11a   :  { %142 = vst [vmem:[#allocation5 + $0x8] sm:$0xff] %v140_v51 }
 0x11b   :  { %202 = shalt.err (!%p199_p12)
}
 0x11c   :  { %s203_s27 = scalar_lea.hbm %s259_s1, 256 }
 0x11d   :  { %p204_p13 = scmp.ne.s32.totalorder %s259_s1, %s203_s27  ;;  %p207_p0 = scmp.lt.u32.totalorder %s203_s27, %s259_s1 }
 0x11f   :  { %p209_p1 = pnand %p207_p0, %p204_p13 }
 0x121   :  { %212 = shalt.err (!%p209_p1)
}
 0x122   :  { %152 = dma.vmem_to_hbm [thread:$0]  %s150_s23, 256, %s259_s1, [#allocation4]  }
 0x123   :  { %215 = dma.done.wait [#allocation4], 256  }
 0x124   :  { %216 = vsyncadd [#allocation4], 4294967040 }
 0x125   :  { %156 = vsyncpa [#allocation3], 1 }
 0x126   :  { %157 = vsyncpa [#allocation4], 1 }

</bundles_post_ra>
